<compile_context>
chip_gen: v5e
topology: v5e:2x2
jax: 0.10.0
libtpu: 0.0.40
codegen_flags: <defaults>
</compile_context>

<pallas_src>
import jax
import jax.numpy as jnp
from jax.experimental import pallas as pl
from jax.experimental.pallas import tpu as pltpu


def _round_up(n, m):
    return -(-n // m) * m


def _sublane_tile(itemsize):
    # Rows per sublane tile: f32 -> 8, bf16 -> 16, int8/fp8 -> 32 (packed dtypes
    # stack along sublanes).
    return max(8, 32 // itemsize)


def _copy_kernel(x_ref, o_ref):
    # Pure VMEM->VMEM copy; the channel shuffle is realised entirely by the
    # input/output BlockSpec index_maps (the HBM DMAs do the permutation).
    o_ref[...] = x_ref[...]


def _transpose_kernel(x_ref, o_ref):
    # Fallback body for H*W not a multiple of 128:
    # (group, c_chunk, hw) -> (c_chunk, group, hw).
    o_ref[...] = jnp.transpose(x_ref[...], (1, 0, 2))


def _pick_c_chunk_fast(cpg, hw, itemsize, budget_bytes):
    """Largest divisor of cpg (multiple of the sublane tile) whose (c_chunk, hw)
    block fits the budget; falls back to the smallest aligned divisor, then cpg."""
    sub = _sublane_tile(itemsize)
    if cpg <= sub or cpg * hw * itemsize <= budget_bytes:
        return cpg
    best = None
    cand = sub
    while cand < cpg:
        if cpg % cand == 0:
            if cand * hw * itemsize <= budget_bytes:
                best = cand            # keep the largest in-budget aligned divisor
            elif best is None:
                best = cand            # nothing fits: smallest aligned divisor
        cand += sub
    return best if best is not None else cpg


def _pick_c_chunk_general(cpg, group, hw_pad, itemsize, sub, budget_bytes):
    """Chunk picker for the transpose fallback; budgets padded in+out block bytes."""
    def blk_bytes(cc):
        in_b = group * _round_up(cc, sub) * hw_pad * itemsize
        out_b = cc * _round_up(group, sub) * hw_pad * itemsize
        return in_b + out_b

    if cpg <= sub or blk_bytes(cpg) <= budget_bytes:
        return cpg
    best = None
    cand = sub
    while cand < cpg:
        if cpg % cand == 0:
            if blk_bytes(cand) <= budget_bytes:
                best = cand
            elif best is None:
                best = cand
        cand += sub
    return best if best is not None else cpg


def channel_shuffle(x: jax.Array, group: int) -> jax.Array:
    """Pallas implementation of ChannelShuffle.forward for NCHW input."""
    b, c, h, w = x.shape
    if c % group != 0:
        raise ValueError("in_channels must be divisible by groups")
    cpg = c // group
    hw = h * w

    if group == 1 or cpg == 1:
        return x  # permutation is the identity

    itemsize = x.dtype.itemsize
    sub = _sublane_tile(itemsize)

    # Contiguous view of NCHW: x5[b, g, j, :] == x[b, g*cpg + j] flattened over H,W.
    x5 = x.reshape(b, group, cpg, hw)

    cost = pl.CostEstimate(
        flops=0, transcendentals=0, bytes_accessed=2 * x.size * itemsize
    )

    if hw % 128 == 0:
        # ---- Fast path: DMA-performed shuffle, kernel body is a dense copy. ----
        c_chunk = _pick_c_chunk_fast(cpg, hw, itemsize, budget_bytes=4 << 20)
        n_chunks = cpg // c_chunk
        block_bytes = _round_up(c_chunk, sub) * hw * itemsize  # hw already lane-dense
        # 2x double-buffered input + 2x output blocks, plus headroom; safe on all
        # generations (v5e/v6e physical 128 MiB, v7x 64 MiB; our footprint ~16 MiB).
        vmem_limit = min(max(48 << 20, 4 * block_bytes + (8 << 20)), 100 << 20)

        out_flat = pl.pallas_call(
            _copy_kernel,
            out_shape=jax.ShapeDtypeStruct((b, cpg, group * hw), x.dtype),
            grid=(b, group, n_chunks),
            in_specs=[
                pl.BlockSpec(
                    (None, None, c_chunk, hw),
                    lambda bi, g, jc: (bi, g, jc, 0),
                )
            ],
            out_specs=pl.BlockSpec(
                (None, c_chunk, hw),
                lambda bi, g, jc: (bi, jc, g),
            ),
            compiler_params=pltpu.CompilerParams(
                dimension_semantics=("parallel", "parallel", "parallel"),
                vmem_limit_bytes=vmem_limit,
            ),
            cost_estimate=cost,
        )(x5)
        # out_flat[b, j, g*hw + p] == x[b, g*cpg + j, p]; flattening (cpg, group*hw)
        # gives output channel j*group + g -- exactly PyTorch's view/permute/reshape.
        return out_flat.reshape(b, c, h, w)

    # ---- Fallback: H*W not a multiple of 128.  Full-extent trailing block dims
    # (always layout-legal); the (group, c_chunk) swap happens in VMEM. ----
    # TODO(synk): very large H*W that is not a multiple of 128 would also need an
    # hw-tiling grid axis; not needed for CGNet-scale shapes.
    hw_pad = _round_up(hw, 128)
    c_chunk = _pick_c_chunk_general(cpg, group, hw_pad, itemsize, sub, budget_bytes=8 << 20)
    n_chunks = cpg // c_chunk
    in_bytes = group * _round_up(c_chunk, sub) * hw_pad * itemsize
    out_bytes = c_chunk * _round_up(group, sub) * hw_pad * itemsize
    vmem_limit = min(max(48 << 20, 2 * (in_bytes + out_bytes) + (8 << 20)), 100 << 20)

    out5 = pl.pallas_call(
        _transpose_kernel,
        out_shape=jax.ShapeDtypeStruct((b, cpg, group, hw), x.dtype),
        grid=(b, n_chunks),
        in_specs=[
            pl.BlockSpec(
                (None, group, c_chunk, hw),
                lambda bi, jc: (bi, 0, jc, 0),
            )
        ],
        out_specs=pl.BlockSpec(
            (None, c_chunk, group, hw),
            lambda bi, jc: (bi, jc, 0, 0),
        ),
        compiler_params=pltpu.CompilerParams(
            dimension_semantics=("parallel", "parallel"),
            vmem_limit_bytes=vmem_limit,
        ),
        cost_estimate=cost,
    )(x5)
    return out5.reshape(b, c, h, w)


def channel_shuffle_ref(x: jax.Array, group: int) -> jax.Array:
    """Pure-JAX reference mirroring the PyTorch view/permute/reshape."""
    b, c, h, w = x.shape
    y = x.reshape(b, group, c // group, h, w)
    y = jnp.transpose(y, (0, 2, 1, 3, 4))
    return y.reshape(b, c, h, w)


if __name__ == "__main__":
    key = jax.random.PRNGKey(0)
    cases = [
        ((2, 4, 16, 16), 2, jnp.float32),   # spec shape; fast (DMA-shuffle) path
        ((1, 32, 16, 8), 4, jnp.bfloat16),  # batch=1, bf16; fast path, >=2 grid steps
        ((2, 6, 10, 10), 3, jnp.float32),   # H*W not a multiple of 128; fallback path
    ]
    for i, (shape, group, dtype) in enumerate(cases):
        key, subkey = jax.random.split(key)
        x = jax.random.normal(subkey, shape, dtype=jnp.float32).astype(dtype)

        out = jax.block_until_ready(channel_shuffle(x, group))
        ref = channel_shuffle_ref(x, group)

        assert out.shape == x.shape, f"case {i}: shape mismatch"
        assert out.dtype == x.dtype, f"case {i}: dtype mismatch"
        assert jnp.array_equal(out, ref), f"case {i}: Pallas ChannelShuffle mismatch vs reference"

    print("KERNEL_OK")
</pallas_src>

<mosaic_0001>
module attributes {stable_mosaic.version = 11 : i64} {
  func.func @_copy_kernel(%arg0: i32, %arg1: i32, %arg2: i32, %arg3: memref<1x1x2x256xf32, #tpu.memory_space<vmem>>, %arg4: memref<1x2x256xf32, #tpu.memory_space<vmem>>) attributes {dimension_semantics = [#tpu.dimension_semantics<parallel>, #tpu.dimension_semantics<parallel>, #tpu.dimension_semantics<parallel>], iteration_bounds = array<i64: 2, 2, 1>, scalar_prefetch = 0 : i64, scratch_operands = 0 : i64, tpu.core_type = #tpu.core_type<tc>, window_params = [{transform_indices = @transform_0, window_bounds = array<i64: 1, 1, 2, 256>}, {transform_indices = @transform_1, window_bounds = array<i64: 1, 2, 256>}]} {
    %c0 = arith.constant 0 : index
    %c0_0 = arith.constant 0 : index
    %c0_1 = arith.constant 0 : index
    %c0_2 = arith.constant 0 : index
    %0 = vector.load %arg3[%c0, %c0_0, %c0_1, %c0_2] : memref<1x1x2x256xf32, #tpu.memory_space<vmem>>, vector<1x1x2x256xf32>
    %1 = vector.shape_cast %0 : vector<1x1x2x256xf32> to vector<2x256xf32>
    %c0_3 = arith.constant 0 : index
    %c0_4 = arith.constant 0 : index
    %c0_5 = arith.constant 0 : index
    %2 = vector.load %arg4[%c0_3, %c0_4, %c0_5] : memref<1x2x256xf32, #tpu.memory_space<vmem>>, vector<1x2x256xf32>
    %3 = vector.shape_cast %2 : vector<1x2x256xf32> to vector<2x256xf32>
    %4 = vector.shape_cast %1 : vector<2x256xf32> to vector<1x2x256xf32>
    tpu.vector_store %arg4[%c0_3, %c0_4, %c0_5], %4 {strides = array<i32>} : memref<1x2x256xf32, #tpu.memory_space<vmem>>, vector<1x2x256xf32>,
    return
  }
  func.func @transform_0(%arg0: i32, %arg1: i32, %arg2: i32) -> (i32, i32, i32, i32) {
    %c0_i32 = arith.constant 0 : i32
    %c0_i32_0 = arith.constant 0 : i32
    return %arg0, %arg1, %arg2, %c0_i32 : i32, i32, i32, i32
  }
  func.func @transform_1(%arg0: i32, %arg1: i32, %arg2: i32) -> (i32, i32, i32) {
    %c0_i32 = arith.constant 0 : i32
    return %arg0, %arg2, %arg1 : i32, i32, i32
  }
}

</mosaic_0001>

<bundles_post_ra>
// kernel: tpu_custom_call.1
= control target key start
LH: loop header
LB: loop body
LE: loop exit
PB: predicated region body
PF: predicated region fallthrough
CT: control target
= control target key end

     0   :  { %6 = vsyncpa [#allocation3], 0  ;;  %s661_s0 = inlined_call_operand.hbm [shape: f32[2,2,2,256], index: 0, kind: input, shape index: {}]   ;;  %s662_s1 = inlined_call_operand.hbm [shape: f32[2,2,512], index: 1, kind: output, shape index: {}]  }
   0x1   :  { %8 = vsyncpa [#allocation3 + $0x1], 0 }
   0x2   :  { %9 = vsyncpa [#allocation4], 0 }
   0x3   :  { %11 = vsyncpa [#allocation4 + $0x1], 0  ;;  %s519_s6 = smov 0   ;;  %s521_s7 = smov 0  }
   0x4   :  { %s523_s8 = smov 0   ;;  %s525_s9 = smov 0  }
   0x5   :  { %s527_s10 = smov 0   ;;  %s529_s11 = smov 0  }
   0x6   :  { %s531_s12 = smov 0   ;;  %s533_s13 = smov 0  }
   0x7 LB: > { %s284_s14 = sadd.s32 4294967295, %s507_s13   ;;  %s285_s15 = sadd.s32 4294967294, %s507_s13   ;;  %s507_s13 = sphi %s533_s13, %s17_s13   ;;  %s503_s12 = sphi %s531_s12, %s673_s12   ;;  %s499_s11 = sphi %s529_s11, %s672_s11   ;;  %s495_s10 = sphi %s527_s10, %s671_s10   ;;  %s491_s9 = sphi %s525_s9, %s670_s9   ;;  %s487_s8 = sphi %s523_s8, %s669_s8   ;;  %s483_s7 = sphi %s521_s7, %s668_s7   ;;  %s479_s6 = sphi %s519_s6, %s667_s6  }
   0x8   : > { %s32_s16 = sadd.s32 1, %s499_s11  ;;  %s36_s17 = sadd.s32 1, %s503_s12 }
   0x9   : > { %p34_p0 = scmp.ge.s32.totalorder %s32_s16, 2  ;;  %s47_s18 = sadd.s32 1, %s487_s8 }
   0xa   : > { %p54_p1 = scmp.ne.s32.totalorder %s487_s8, %s483_s7  ;;  %p55_p2 = scmp.eq.s32.totalorder %s507_s13, 0 }
   0xb   : > { %s675_s16 = smov (%p34_p0, %s32_s16), 0  ;;  %s677_s17 = smov (!%p34_p0, %s36_s17), %s503_s12 }
   0xc   : > { %s41_s19 = ssub.s32 %s499_s11, %s675_s16  ;;  %p572_p3 = por %p55_p2, %p54_p1 }
   0xd   : > { %p38_p4 = scmp.ge.s32.totalorder %s677_s17, 2  ;;  %p60_p5 = scmp.ne.s32.totalorder %s483_s7, %s479_s6 }
   0xe   : > { %p61_p6 = scmp.eq.s32.totalorder %s284_s14, 0  ;;  %p88_p7 = scmp.eq.s32.totalorder %s284_s14, 3 }
   0xf   : > { %s679_s17 = smov (%p38_p4, %s677_s17), 0  ;;  %p94_p10 = scmp.eq.s32.totalorder %s285_s15, 3 }
  0x10   : > { %p580_p8 = por %p61_p6, %p60_p5  ;;  %p584_p9 = por %p88_p7, %p54_p1 }
  0x11   : > { %s40_s23 = ssub.s32 %s503_s12, %s679_s17  ;;  %p590_p12 = por %p94_p10, %p60_p5 }
  0x12   : > { %s42_s24 = sor.u32 %s41_s19, %s40_s23  ;;  %p313_p13 = scmp.lt.s32.totalorder %s507_s13, 4 }
  0x13   : > { %p45_p11 = scmp.eq.s32.totalorder %s42_s24, 0  ;;  %s114_s26 = sand.u32 1, %s487_s8  }
  0x14   : > { %s288_s28 = sshll.u32 %s114_s26, 2  ;;  %s289_s29 = sshll.u32 %s499_s11, 1 }
  0x15   : > { %s597_s27 = scalar_select %p45_p11, %s487_s8, %s47_s18  }
  0x16   : > { %s290_s30 = sshll.u32 %s503_s12, 2  ;;  %s118_s2 = scalar_lea.vmem [#allocation2], %s288_s28 }
  0x17   : > { %s131_s3 = sshll.u32 %s118_s2, 4  ;;  %s125_s4 = sadd.s32 %s290_s30, %s289_s29  ;;  %s132_s3 = int_to_ptr.vmem [resolvable:$true] %s131_s3 }
  0x18   : > { %s291_s5 = sshll.u32 %s125_s4, 1  ;;  %p306_p0 = pnand %p313_p13, %p572_p3 }
  0x19   : > { %s127_s19 = scalar_lea.hbm %s661_s0, %s291_s5  ;;  %p292_p1 = scmp.ge.s32.totalorder %s507_s13, 1 }
  0x1a   : > { %s129_s23 = sshll.u32 %s127_s19, 4  ;;  %p136_p2 = scmp.lt.s32.totalorder %s507_s13, 5  ;;  %s130_s23 = int_to_ptr.hbm [resolvable:$true] %s129_s23 }
  0x1b   : > { %s115_s18 = scalar_lea.sflag [#allocation3], %s114_s26 }
  0x1c   : > { %308 = dma.hbm_to_vmem [thread:$0]  (!%p306_p0), %s130_s23, 64, %s132_s3, %s115_s18  }
  0x1d   : > { %p137_p4 = pnand %p292_p1, %p136_p2 }
  0x1e   : > { %s609_s24 = sand.u32 (!%p137_p4), 1, %s483_s7  }
  0x1f   : > { %140 = sbr.rel (%p137_p4) target bundleno = 54 (0x36), region = 24  ;;  %s293_s20 = sshll.u32 (!%p137_p4), %s609_s24, 2 }
  0x20   : > { %s143_s28 = scalar_lea.sflag (!%p137_p4), [#allocation3], %s609_s24  ;;  %s146_s29 = scalar_lea.vmem (!%p137_p4), [#allocation2], %s293_s20 }
  0x24   : > { %470 = dma.done.wait (%p580_p8), %s143_s28, 64  }
  0x25   : > { %472 = vsyncadd (%p580_p8), %s143_s28, 4294967232  ;;  %s296_s26 = sshll.u32 %s491_s9, 1  ;;  %s297_s30 = sshll.u32 %s495_s10, 2  ;;  %v167_v0 = vld [vmem:[%s146_s29] sm:$0xf] }
  0x26   : > { %s165_s2 = scalar_lea.vmem [#allocation5], %s293_s20  ;;  %s183_s4 = sadd.s32 %s297_s30, %s296_s26 }
  0x27   : > { %s187_s3 = sshll.u32 %s165_s2, 4  ;;  %s298_s5 = sshll.u32 %s183_s4, 1  ;;  %168 = vst [vmem:[%s165_s2] sm:$0xf] %v167_v0  ;;  %s188_s3 = int_to_ptr.vmem [resolvable:$true] %s187_s3 }
  0x28   : > { %s185_s19 = scalar_lea.hbm %s662_s1, %s298_s5  ;;  %s170_s21 = scalar_lea.sflag [#allocation4], %s609_s24 }
  0x29   : > { %s189_s23 = sshll.u32 %s185_s19, 4  ;;  %s429_s20 = scalar_lea.hbm %s662_s1, 16  ;;  %s190_s23 = int_to_ptr.hbm [resolvable:$true] %s189_s23 }
  0x2a   : > { %s423_s18 = sshra.s32 %s190_s23, 4  ;;  %s424_s18 = int_to_ptr.hbm [resolvable:$true] %s423_s18 }
  0x2b   : > { %s425_s28 = scalar_lea.hbm %s424_s18, 4  ;;  %p430_p7 = scmp.lt.s32.totalorder %s424_s18, %s662_s1 }
  0x2c   : > { %p426_p3 = scmp.ne.s32.totalorder %s424_s18, %s425_s28  ;;  %p431_p8 = scmp.lt.s32.totalorder %s429_s20, %s425_s28 }
  0x2e   : > { %p427_p5 = pnand %p426_p3, %p584_p9  ;;  %p432_p10 = por %p431_p8, %p430_p7 }
  0x30   : > { %p428_p6 = pneg %p427_p5 }
  0x32   : > { %p433_p11 = pnand %p432_p10, %p428_p6 }
  0x34   : > { %436 = shalt.err (!%p433_p11)
}
  0x35   : > { %303 = dma.vmem_to_hbm [thread:$0]  (%p584_p9), %s188_s3, 64, %s190_s23, %s170_s21  }
  0x36 PF: > { %p314_p13 = scmp.ge.s32.totalorder %s507_s13, 2  ;;  %s201_s24 = sand.u32 1, %s479_s6  }
  0x37   : > { %s202_s29 = scalar_lea.sflag [#allocation4], %s201_s24 }
  0x38   : > { %p310_p0 = pnand %p314_p13, %p590_p12 }
  0x3a   : > { %p311_p1 = pneg %p310_p0 }
  0x3c   : > { %474 = dma.done.wait (%p311_p1), %s202_s29, 64  }
  0x3d   : > { %476 = vsyncadd (%p311_p1), %s202_s29, 4294967232  ;;  %s17_s13 = sadd.s32 1, %s507_s13   ;;  %s667_s6 = smov %s483_s7 }
  0x3e   : > { %p14_p2 = scmp.ge.s32.totalorder %s17_s13, 6   ;;  %s668_s7 = smov %s487_s8 }
  0x3f   : > { %s669_s8 = smov %s597_s27  ;;  %s670_s9 = smov %s499_s11 }
  0x40   : > { %s671_s10 = smov %s503_s12  ;;  %s672_s11 = smov %s675_s16 }
  0x41   : > { %s673_s12 = smov %s679_s17  ;;  %16 = sbr.rel (!%p14_p2) target bundleno = 7 (0x7), region = 69 }
  0x46   :  { %208 = vsyncpa [#allocation3], 1 }
  0x47   :  { %210 = vsyncpa [#allocation3 + $0x1], 1 }
  0x48   :  { %211 = vsyncpa [#allocation4], 1 }
  0x49   :  { %213 = vsyncpa [#allocation4 + $0x1], 1 }

</bundles_post_ra>
